<compile_context>
chip_gen: v7x
topology: tpu7x:2x2x1
jax: 0.10.0
libtpu: 0.0.40
codegen_flags: <defaults>
</compile_context>

<pallas_src>
import jax
import jax.numpy as jnp
import numpy as np
from jax.experimental import pallas as pl
from jax.experimental.pallas import tpu as pltpu


def embnet_kernel(idx_ref, weff_ref, bias_ref, out_ref):
    """One batch tile of the EmbNet forward.

    idx_ref  : (TB, S)    int32   token indices
    weff_ref : (S*E, C)   float32 fused embedding x linear weight
    bias_ref : (1, C)     float32 linear bias
    out_ref  : (TB, C)    float32 log_softmax(logits)
    """
    TB, S = idx_ref.shape
    SE, _ = weff_ref.shape           # S*E (exactly 2 lane-tiles at S=8, E=32)
    E = SE // S

    # Flattened (position, token) column index, computed once: s*E + idx[b, s].
    pos_off = jax.lax.broadcasted_iota(jnp.int32, (1, S), 1) * E
    fidx = idx_ref[...] + pos_off                        # (TB, S) int32

    # Single hoisted iota covering all selector columns.
    cols = jax.lax.broadcasted_iota(jnp.int32, (TB, SE), 1)

    # Build the multi-hot selector directly into ONE live f32 accumulator.
    # S is small & static -> unrolled VPU compare/add loop, no matmuls.  Columns
    # hit per position are disjoint (each s owns lanes [s*E, (s+1)*E)).
    onehot = jnp.zeros((TB, SE), jnp.float32)
    for s in range(S):
        onehot = onehot + (cols == fidx[:, s:s + 1]).astype(jnp.float32)

    # Single MXU matmul (K = S*E = one 256-wide pass on v6e/v7x, two on v5e),
    # then one cheap VPU broadcast-add for the bias.
    logits = jnp.dot(onehot, weff_ref[...],
                     preferred_element_type=jnp.float32) + bias_ref[...]

    # Numerically-stable log_softmax along the class dim.
    m = jnp.max(logits, axis=-1, keepdims=True)
    shifted = logits - m
    lse = jnp.log(jnp.sum(jnp.exp(shifted), axis=-1, keepdims=True))
    out_ref[...] = (shifted - lse).astype(out_ref.dtype)


def fuse_embnet_params(emb_table, fc_weight):
    """Init-time, parameter-only fusion of embedding + linear (no bias row).

    Returns Weff of shape (S*E, C) with
        Weff[s*E + e, c] = sum_h emb_table[e, h] * fc_weight[c, s*H1 + h].
    """
    E, H1 = emb_table.shape
    n_cls, H2 = fc_weight.shape
    assert H2 % H1 == 0, "hidden_size2 must be a multiple of hidden_size1"
    S = H2 // H1
    w3 = fc_weight.reshape(n_cls, S, H1)                    # (C, S, H1)
    weff = jnp.einsum("eh,csh->sec", emb_table, w3,
                      precision=jax.lax.Precision.HIGHEST)  # (S, E, C)
    return weff.reshape(S * E, n_cls)


def embnet_forward(x_idx, weff, fc_bias, *, batch_tile=128):
    B, S = x_idx.shape
    SE, n_cls = weff.shape

    # batch_tile controls the (TB, S*E) one-hot working set; 128 fits the vreg
    # file after the K=256 / single-accumulator fixes.  At B >= 2*batch_tile the
    # grid has >= 2 steps so the "parallel" axis can shard across v7x's 2 TCs;
    # at B=8 it correctly degenerates to grid=(1,).
    TB = min(B, batch_tile)
    assert B % TB == 0, "batch must be divisible by the batch tile"

    return pl.pallas_call(
        embnet_kernel,
        out_shape=jax.ShapeDtypeStruct((B, n_cls), jnp.float32),
        grid=(B // TB,),
        in_specs=[
            pl.BlockSpec((TB, S), lambda i: (i, 0)),       # token indices (per tile)
            pl.BlockSpec((SE, n_cls), lambda i: (0, 0)),   # fused weight (grid-invariant)
            pl.BlockSpec((1, n_cls), lambda i: (0, 0)),    # bias row (grid-invariant)
        ],
        out_specs=pl.BlockSpec((TB, n_cls), lambda i: (i, 0)),
        compiler_params=pltpu.CompilerParams(
            dimension_semantics=("parallel",)),            # megacore-ready on v7x
    )(x_idx.astype(jnp.int32), weff, fc_bias.reshape(1, n_cls).astype(jnp.float32))


def reference_forward(x_idx, emb_table, fc_weight, fc_bias):
    B = x_idx.shape[0]
    embeds = emb_table[x_idx]                     # (B, S, H1)
    flat = embeds.reshape(B, -1)                  # (B, S*H1)  — PyTorch .view order
    logits = flat @ fc_weight.T + fc_bias         # (B, 3)
    return jax.nn.log_softmax(logits, axis=-1)


if __name__ == "__main__":
    # emb_size=32, hidden_size1=16, seq_len=8 -> hidden_size2 = 8*16 = 128
    B, S = 8, 8
    EMB_SIZE, H1 = 32, 16
    H2 = S * H1

    key = jax.random.PRNGKey(0)
    k_idx, k_emb, k_w, k_b = jax.random.split(key, 4)

    emb_table = jax.random.normal(k_emb, (EMB_SIZE, H1), dtype=jnp.float32)
    fc_weight = jax.random.uniform(k_w, (3, H2), dtype=jnp.float32,
                                   minval=-0.1, maxval=0.1)   # PyTorch (out, in)
    fc_bias = jax.random.uniform(k_b, (3,), dtype=jnp.float32,
                                 minval=-0.1, maxval=0.1)
    x_idx = jax.random.randint(k_idx, (B, S), 0, EMB_SIZE, dtype=jnp.int32)

    # One-time parameter fusion (analogous to pre-transposing fc_weight).
    weff = jax.block_until_ready(fuse_embnet_params(emb_table, fc_weight))

    out = embnet_forward(x_idx, weff, fc_bias)
    out = jax.block_until_ready(out)

    ref = reference_forward(x_idx, emb_table, fc_weight, fc_bias)
    if not np.allclose(np.asarray(out), np.asarray(ref), atol=1e-5, rtol=1e-5):
        raise AssertionError("Pallas kernel output does not match JAX reference")

    print("KERNEL_OK")
</pallas_src>

<mosaic_0001>
module attributes {stable_mosaic.version = 11 : i64} {
  func.func @embnet_kernel(%arg0: i32, %arg1: memref<8x8xi32, #tpu.memory_space<vmem>>, %arg2: memref<256x3xf32, #tpu.memory_space<vmem>>, %arg3: memref<1x3xf32, #tpu.memory_space<vmem>>, %arg4: memref<8x3xf32, #tpu.memory_space<vmem>>) attributes {dimension_semantics = [#tpu.dimension_semantics<parallel>], iteration_bounds = array<i64: 1>, scalar_prefetch = 0 : i64, scratch_operands = 0 : i64, tpu.core_type = #tpu.core_type<tc>, window_params = [{transform_indices = @transform_0, window_bounds = array<i64: 8, 8>}, {pipeline_mode = #tpu.pipeline_mode<synchronous>, transform_indices = @transform_1, window_bounds = array<i64: 256, 3>}, {pipeline_mode = #tpu.pipeline_mode<synchronous>, transform_indices = @transform_2, window_bounds = array<i64: 1, 3>}, {transform_indices = @transform_3, window_bounds = array<i64: 8, 3>}]} {
    %0 = tpu.iota {dimensions = array<i32: 1>} : vector<1x8xi32>
    %c32_i32 = arith.constant 32 : i32
    %1 = vector.broadcast %c32_i32 : i32 to vector<1x8xi32>
    %2 = arith.muli %0, %1 : vector<1x8xi32>
    %c0 = arith.constant 0 : index
    %c0_0 = arith.constant 0 : index
    %3 = vector.load %arg1[%c0, %c0_0] : memref<8x8xi32, #tpu.memory_space<vmem>>, vector<8x8xi32>
    %4 = vector.broadcast %2 : vector<1x8xi32> to vector<8x8xi32>
    %5 = arith.addi %3, %4 : vector<8x8xi32>
    %6 = tpu.iota {dimensions = array<i32: 1>} : vector<8x256xi32>
    %cst = arith.constant 0.000000e+00 : f32
    %7 = vector.broadcast %cst : f32 to vector<8x256xf32>
    %8 = vector.extract_strided_slice %5 {offsets = [0, 0], sizes = [8, 1], strides = [1, 1]} : vector<8x8xi32> to vector<8x1xi32>
    %9 = vector.broadcast %8 : vector<8x1xi32> to vector<8x256xi32>
    %10 = arith.cmpi eq, %6, %9 : vector<8x256xi32>
    %11 = arith.extui %10 : vector<8x256xi1> to vector<8x256xi32>
    %12 = arith.sitofp %11 : vector<8x256xi32> to vector<8x256xf32>
    %13 = arith.addf %7, %12 : vector<8x256xf32>
    %14 = vector.extract_strided_slice %5 {offsets = [0, 1], sizes = [8, 1], strides = [1, 1]} : vector<8x8xi32> to vector<8x1xi32>
    %15 = vector.broadcast %14 : vector<8x1xi32> to vector<8x256xi32>
    %16 = arith.cmpi eq, %6, %15 : vector<8x256xi32>
    %17 = arith.extui %16 : vector<8x256xi1> to vector<8x256xi32>
    %18 = arith.sitofp %17 : vector<8x256xi32> to vector<8x256xf32>
    %19 = arith.addf %13, %18 : vector<8x256xf32>
    %20 = vector.extract_strided_slice %5 {offsets = [0, 2], sizes = [8, 1], strides = [1, 1]} : vector<8x8xi32> to vector<8x1xi32>
    %21 = vector.broadcast %20 : vector<8x1xi32> to vector<8x256xi32>
    %22 = arith.cmpi eq, %6, %21 : vector<8x256xi32>
    %23 = arith.extui %22 : vector<8x256xi1> to vector<8x256xi32>
    %24 = arith.sitofp %23 : vector<8x256xi32> to vector<8x256xf32>
    %25 = arith.addf %19, %24 : vector<8x256xf32>
    %26 = vector.extract_strided_slice %5 {offsets = [0, 3], sizes = [8, 1], strides = [1, 1]} : vector<8x8xi32> to vector<8x1xi32>
    %27 = vector.broadcast %26 : vector<8x1xi32> to vector<8x256xi32>
    %28 = arith.cmpi eq, %6, %27 : vector<8x256xi32>
    %29 = arith.extui %28 : vector<8x256xi1> to vector<8x256xi32>
    %30 = arith.sitofp %29 : vector<8x256xi32> to vector<8x256xf32>
    %31 = arith.addf %25, %30 : vector<8x256xf32>
    %32 = vector.extract_strided_slice %5 {offsets = [0, 4], sizes = [8, 1], strides = [1, 1]} : vector<8x8xi32> to vector<8x1xi32>
    %33 = vector.broadcast %32 : vector<8x1xi32> to vector<8x256xi32>
    %34 = arith.cmpi eq, %6, %33 : vector<8x256xi32>
    %35 = arith.extui %34 : vector<8x256xi1> to vector<8x256xi32>
    %36 = arith.sitofp %35 : vector<8x256xi32> to vector<8x256xf32>
    %37 = arith.addf %31, %36 : vector<8x256xf32>
    %38 = vector.extract_strided_slice %5 {offsets = [0, 5], sizes = [8, 1], strides = [1, 1]} : vector<8x8xi32> to vector<8x1xi32>
    %39 = vector.broadcast %38 : vector<8x1xi32> to vector<8x256xi32>
    %40 = arith.cmpi eq, %6, %39 : vector<8x256xi32>
    %41 = arith.extui %40 : vector<8x256xi1> to vector<8x256xi32>
    %42 = arith.sitofp %41 : vector<8x256xi32> to vector<8x256xf32>
    %43 = arith.addf %37, %42 : vector<8x256xf32>
    %44 = vector.extract_strided_slice %5 {offsets = [0, 6], sizes = [8, 1], strides = [1, 1]} : vector<8x8xi32> to vector<8x1xi32>
    %45 = vector.broadcast %44 : vector<8x1xi32> to vector<8x256xi32>
    %46 = arith.cmpi eq, %6, %45 : vector<8x256xi32>
    %47 = arith.extui %46 : vector<8x256xi1> to vector<8x256xi32>
    %48 = arith.sitofp %47 : vector<8x256xi32> to vector<8x256xf32>
    %49 = arith.addf %43, %48 : vector<8x256xf32>
    %50 = vector.extract_strided_slice %5 {offsets = [0, 7], sizes = [8, 1], strides = [1, 1]} : vector<8x8xi32> to vector<8x1xi32>
    %51 = vector.broadcast %50 : vector<8x1xi32> to vector<8x256xi32>
    %52 = arith.cmpi eq, %6, %51 : vector<8x256xi32>
    %53 = arith.extui %52 : vector<8x256xi1> to vector<8x256xi32>
    %54 = arith.sitofp %53 : vector<8x256xi32> to vector<8x256xf32>
    %55 = arith.addf %49, %54 : vector<8x256xf32>
    %c0_1 = arith.constant 0 : index
    %c0_2 = arith.constant 0 : index
    %56 = vector.load %arg2[%c0_1, %c0_2] : memref<256x3xf32, #tpu.memory_space<vmem>>, vector<256x3xf32>
    %cst_3 = arith.constant dense<0.000000e+00> : vector<8x3xf32>
    %57 = tpu.matmul %55, %56, %cst_3 {dimension_numbers = #tpu.dot_dimension_numbers<[1], [0], [0], [1], [0, 0, 1, 1], [], []>} : vector<8x256xf32>, vector<256x3xf32>, vector<8x3xf32> -> vector<8x3xf32>
    %c0_4 = arith.constant 0 : index
    %c0_5 = arith.constant 0 : index
    %58 = vector.load %arg3[%c0_4, %c0_5] : memref<1x3xf32, #tpu.memory_space<vmem>>, vector<1x3xf32>
    %59 = vector.broadcast %58 : vector<1x3xf32> to vector<8x3xf32>
    %60 = arith.addf %57, %59 : vector<8x3xf32>
    %cst_6 = arith.constant dense<0xFF800000> : vector<8xf32>
    %61 = vector.multi_reduction <maximumf>, %60, %cst_6 [1] : vector<8x3xf32> to vector<8xf32>
    %62 = vector.shape_cast %61 : vector<8xf32> to vector<8x1xf32>
    %63 = vector.broadcast %62 : vector<8x1xf32> to vector<8x3xf32>
    %64 = arith.subf %60, %63 : vector<8x3xf32>
    %65 = math.exp %64 : vector<8x3xf32>
    %cst_7 = arith.constant dense<0.000000e+00> : vector<8xf32>
    %66 = vector.multi_reduction <add>, %65, %cst_7 [1] : vector<8x3xf32> to vector<8xf32>
    %67 = vector.shape_cast %66 : vector<8xf32> to vector<8x1xf32>
    %68 = math.log %67 : vector<8x1xf32>
    %69 = vector.broadcast %68 : vector<8x1xf32> to vector<8x3xf32>
    %70 = arith.subf %64, %69 : vector<8x3xf32>
    %c0_8 = arith.constant 0 : index
    %c0_9 = arith.constant 0 : index
    %71 = vector.load %arg4[%c0_8, %c0_9] : memref<8x3xf32, #tpu.memory_space<vmem>>, vector<8x3xf32>
    tpu.vector_store %arg4[%c0_8, %c0_9], %70 {strides = array<i32>} : memref<8x3xf32, #tpu.memory_space<vmem>>, vector<8x3xf32>,
    return
  }
  func.func @transform_0(%arg0: i32) -> (i32, i32) {
    %c0_i32 = arith.constant 0 : i32
    %c0_i32_0 = arith.constant 0 : i32
    return %arg0, %c0_i32 : i32, i32
  }
  func.func @transform_1(%arg0: i32) -> (i32, i32) {
    %c0_i32 = arith.constant 0 : i32
    %c0_i32_0 = arith.constant 0 : i32
    %c0_i32_1 = arith.constant 0 : i32
    return %c0_i32, %c0_i32_0 : i32, i32
  }
  func.func @transform_2(%arg0: i32) -> (i32, i32) {
    %c0_i32 = arith.constant 0 : i32
    %c0_i32_0 = arith.constant 0 : i32
    %c0_i32_1 = arith.constant 0 : i32
    return %c0_i32, %c0_i32_0 : i32, i32
  }
  func.func @transform_3(%arg0: i32) -> (i32, i32) {
    %c0_i32 = arith.constant 0 : i32
    %c0_i32_0 = arith.constant 0 : i32
    return %arg0, %c0_i32 : i32, i32
  }
}

</mosaic_0001>

<bundles_post_ra>
// kernel: tpu_custom_call.1
= control target key start
LH: loop header
LB: loop body
LE: loop exit
PB: predicated region body
PF: predicated region fallthrough
CT: control target
= control target key end

     0   :  { %v14_v0 = vlaneseq  ;;  %v341_v1 = vmov 2   ;;  %v342_v2 = vmov 0   ;;  %v343_v28 = vmov 3   ;;  %s500_s0 = inlined_call_operand.vmem [shape: s32[8,8], index: 0, kind: input, shape index: {}]   ;;  %s501_s1 = inlined_call_operand.vmem [shape: f32[256,3], index: 1, kind: input, shape index: {}]   ;;  %s502_s2 = inlined_call_operand.vmem [shape: f32[1,3], index: 2, kind: input, shape index: {}]   ;;  %s503_s3 = inlined_call_operand.vmem [shape: f32[8,3], index: 3, kind: output, shape index: {}]  }
   0x1   :  { %330 = vset.pattern.permute.xlu1 %v341_v1  ;;  %328 = vset.pattern.permute.xlu0 %v342_v2  ;;  %v17_v3 = vld [vmem:[%s500_s0] sm:$0xff]  ;;  %v125_v6 = vld [vmem:[%s501_s1 + $0x88] sm:$0xff]  ;;  %v126_v11 = vld [vmem:[%s501_s1 + $0x90] sm:$0xff]  ;;  %v344_v29 = vmov 1   ;;  %v345_v38 = vmov 4   ;;  %v346_v39 = vmov 5  }
   0x2   :  { %v124_v4 = vld [vmem:[%s501_s1 + $0x80] sm:$0xff]  ;;  %v376_v5 = vand.u32 127, %v14_v0  ;;  %v109_v8 = vld [vmem:[%s501_s1 + $0x8] sm:$0xff]  ;;  %v127_v12 = vld [vmem:[%s501_s1 + $0x98] sm:$0xff]  ;;  %v347_v46 = vmov 6   ;;  %v348_v49 = vmov 7  }
   0x3   :  { %v108_v7 = vld [vmem:[%s501_s1] sm:$0xff]  ;;  %v287_v9 = vpack.c.bf16 %v125_v6, %v124_v4  ;;  %v110_v13 = vld [vmem:[%s501_s1 + $0x10] sm:$0xff]  ;;  %v291_v15 = vpack.c.bf16 %v127_v12, %v126_v11  ;;  %v111_v16 = vld [vmem:[%s501_s1 + $0x18] sm:$0xff]  ;;  %v349_v2 = vmov 0.0  }
   0x4   :  { %v289_v10 = vpack.c.bf16 %v109_v8, %v108_v7  ;;  %v16_v14 = vmul.u32 32, %v376_v5  ;;  %v293_v18 = vpack.c.bf16 %v111_v16, %v110_v13  ;;  %v128_v19 = vld [vmem:[%s501_s1 + $0xa0] sm:$0xff]  ;;  %v129_v20 = vld [vmem:[%s501_s1 + $0xa8] sm:$0xff]  ;;  %v130_v25 = vld [vmem:[%s501_s1 + $0xb0] sm:$0xff]  ;;  %v19_v63 = vadd.s32 128, %v376_v5 }
   0x5   :  { %288 = vmatprep.subr.bf16.mxu0 %v287_v9  ;;  %v295_v21 = vpack.c.bf16 %v129_v20, %v128_v19  ;;  %v112_v22 = vld [vmem:[%s501_s1 + $0x20] sm:$0xff]  ;;  %v113_v23 = vld [vmem:[%s501_s1 + $0x28] sm:$0xff]  ;;  %v131_v26 = vld [vmem:[%s501_s1 + $0xb8] sm:$0xff] }
   0x6   :  { %v400_v17 = vadd.s32 %v17_v3, %v16_v14  ;;  %290 = vmatpush3.bf16.msra.mxu0 %v289_v10  ;;  %v297_v24 = vpack.c.bf16 %v113_v23, %v112_v22  ;;  %v299_v27 = vpack.c.bf16 %v131_v26, %v130_v25  ;;  %v114_v30 = vld [vmem:[%s501_s1 + $0x30] sm:$0xff]  ;;  %v115_v31 = vld [vmem:[%s501_s1 + $0x38] sm:$0xff]  ;;  %v132_v32 = vld [vmem:[%s501_s1 + $0xc0] sm:$0xff] }
   0x7   :  { %292 = vmatprep.subr.bf16.mxu0 %v291_v15  ;;  %v133_v33 = vld [vmem:[%s501_s1 + $0xc8] sm:$0xff]  ;;  %v301_v34 = vpack.c.bf16 %v115_v31, %v114_v30  ;;  %v116_v36 = vld [vmem:[%s501_s1 + $0x40] sm:$0xff]  ;;  %v134_v40 = vld [vmem:[%s501_s1 + $0xd0] sm:$0xff] }
   0x8   :  { %43 = vperm.xlu1 %330, %v400_v17   ;;  %21 = vperm.xlu0 %328, %v400_v17   ;;  %v303_v35 = vpack.c.bf16 %v133_v33, %v132_v32  ;;  %v117_v37 = vld [vmem:[%s501_s1 + $0x48] sm:$0xff]  ;;  %v135_v41 = vld [vmem:[%s501_s1 + $0xd8] sm:$0xff]  ;;  %v118_v44 = vld [vmem:[%s501_s1 + $0x50] sm:$0xff] }
   0x9   :  { %v305_v42 = vpack.c.bf16 %v117_v37, %v116_v36  ;;  %v307_v43 = vpack.c.bf16 %v135_v41, %v134_v40  ;;  %v119_v45 = vld [vmem:[%s501_s1 + $0x58] sm:$0xff]  ;;  %v136_v47 = vld [vmem:[%s501_s1 + $0xe0] sm:$0xff]  ;;  %v137_v48 = vld [vmem:[%s501_s1 + $0xe8] sm:$0xff] }
   0xa   :  { %294 = vmatpush3.bf16.msra.mxu0 %v293_v18  ;;  %v309_v50 = vpack.c.bf16 %v119_v45, %v118_v44  ;;  %v311_v51 = vpack.c.bf16 %v137_v48, %v136_v47  ;;  %v120_v52 = vld [vmem:[%s501_s1 + $0x60] sm:$0xff]  ;;  %v121_v53 = vld [vmem:[%s501_s1 + $0x68] sm:$0xff]  ;;  %v138_v54 = vld [vmem:[%s501_s1 + $0xf0] sm:$0xff] }
   0xb   :  { %296 = vmatprep.subr.bf16.mxu0 %v295_v21  ;;  %v139_v55 = vld [vmem:[%s501_s1 + $0xf8] sm:$0xff]  ;;  %v313_v56 = vpack.c.bf16 %v121_v53, %v120_v52  ;;  %v122_v58 = vld [vmem:[%s501_s1 + $0x70] sm:$0xff]  ;;  %v251_v40 = vld [vmem:[%s502_s2] ss:$0 sm:$0xff] }
   0xc   :  { %331 = vset.pattern.permute.xlu1 %v343_v28  ;;  %329 = vset.pattern.permute.xlu0 %v344_v29  ;;  %v315_v57 = vpack.c.bf16 %v139_v55, %v138_v54  ;;  %v123_v59 = vld [vmem:[%s501_s1 + $0x78] sm:$0xff] }
   0xd   :  { %54 = vperm.xlu1 %331, %v400_v17   ;;  %32 = vperm.xlu0 %329, %v400_v17   ;;  %v317_v60 = vpack.c.bf16 %v123_v59, %v122_v58 }
   0xe   :  { %298 = vmatpush3.bf16.msra.mxu0 %v297_v24 }
   0xf   :  { %300 = vmatprep.subr.bf16.mxu0 %v299_v27 }
  0x11   :  { %332 = vset.pattern.permute.xlu1 %v345_v38  ;;  %333 = vset.pattern.permute.xlu0 %v346_v39 }
  0x12   :  { %65 = vperm.xlu1 %332, %v400_v17   ;;  %76 = vperm.xlu0 %333, %v400_v17  }
  0x13   :  { %302 = vmatpush3.bf16.msra.mxu0 %v301_v34 }
  0x14   :  { %304 = vmatprep.subr.bf16.mxu0 %v303_v35 }
  0x16   :  { %334 = vset.pattern.permute.xlu1 %v347_v46  ;;  %336 = vset.pattern.permute.xlu0 %v348_v49 }
  0x17   :  { %87 = vperm.xlu1 %334, %v400_v17   ;;  %306 = vmatpush3.bf16.msra.mxu0 %v305_v42 }
  0x18   :  { %308 = vmatprep.subr.bf16.mxu0 %v307_v43 }
  0x1b   :  { %335 = vset.pattern.permute.xlu1 %v348_v49  ;;  %310 = vmatpush3.bf16.msra.mxu0 %v309_v50 }
  0x1c   :  { %98 = vperm.xlu1 %335, %v400_v17   ;;  %312 = vmatprep.subr.bf16.mxu0 %v311_v51 }
  0x1f   :  { %314 = vmatpush3.bf16.msra.mxu0 %v313_v56 }
  0x20   :  { %316 = vmatprep.subr.bf16.mxu0 %v315_v57 }
  0x23   :  { %318 = vmatpush3.bf16.msra.mxu0 %v317_v60 }
  0x87   :  { %v44_v61 = vpop.permute.xlu1 %43  ;;  %v22_v62 = vpop.permute.xlu0 %21 }
  0x88   :  { %vm23_vm0 = vcmp.eq.s32.totalorder %v376_v5, %v22_v62  ;;  %vm24_vm1 = vcmp.eq.s32.totalorder %v19_v63, %v22_v62  ;;  %vm45_vm2 = vcmp.eq.s32.totalorder %v376_v5, %v44_v61  ;;  %vm46_vm3 = vcmp.eq.s32.totalorder %v19_v63, %v44_v61 }
  0x89   :  { %v235_v3 = vsel %vm23_vm0, 1.0, %v349_v2  ;;  %v236_v4 = vsel %vm24_vm1, 1.0, %v349_v2  ;;  %v239_v10 = vsel %vm45_vm2, 1.0, %v349_v2  ;;  %v240_v11 = vsel %vm46_vm3, 1.0, %v349_v2 }
  0x8a   :  { %vm217_vm0 = vcmask 23552  }
  0x8c   :  { %v55_v0 = vpop.permute.xlu1 %54  ;;  %v33_v1 = vpop.permute.xlu0 %32 }
  0x8d   :  { %vm34_vm4 = vcmp.eq.s32.totalorder %v376_v5, %v33_v1  ;;  %vm35_vm5 = vcmp.eq.s32.totalorder %v19_v63, %v33_v1  ;;  %vm56_vm6 = vcmp.eq.s32.totalorder %v376_v5, %v55_v0  ;;  %vm57_vm7 = vcmp.eq.s32.totalorder %v19_v63, %v55_v0 }
  0x8e   :  { %v237_v6 = vsel %vm34_vm4, 1.0, %v349_v2  ;;  %v238_v7 = vsel %vm35_vm5, 1.0, %v349_v2  ;;  %v241_v12 = vsel %vm56_vm6, 1.0, %v349_v2  ;;  %v242_v13 = vsel %vm57_vm7, 1.0, %v349_v2 }
  0x8f   :  { %v40_v8 = vadd.f32 %v237_v6, %v235_v3  ;;  %v41_v9 = vadd.f32 %v238_v7, %v236_v4 }
  0x91   :  { %v51_v14 = vadd.f32 %v239_v10, %v40_v8  ;;  %v52_v15 = vadd.f32 %v240_v11, %v41_v9  ;;  %v66_v16 = vpop.permute.xlu1 %65  ;;  %v77_v17 = vpop.permute.xlu0 %76 }
  0x92   :  { %vm67_vm8 = vcmp.eq.s32.totalorder %v376_v5, %v66_v16  ;;  %vm68_vm9 = vcmp.eq.s32.totalorder %v19_v63, %v66_v16  ;;  %vm78_vm10 = vcmp.eq.s32.totalorder %v376_v5, %v77_v17  ;;  %vm79_vm11 = vcmp.eq.s32.totalorder %v19_v63, %v77_v17 }
  0x93   :  { %v62_v18 = vadd.f32 %v241_v12, %v51_v14  ;;  %v63_v19 = vadd.f32 %v242_v13, %v52_v15  ;;  %v243_v20 = vsel %vm67_vm8, 1.0, %v349_v2  ;;  %v244_v21 = vsel %vm68_vm9, 1.0, %v349_v2 }
  0x94   :  { %v245_v24 = vsel %vm78_vm10, 1.0, %v349_v2  ;;  %v246_v25 = vsel %vm79_vm11, 1.0, %v349_v2 }
  0x95   :  { %v73_v22 = vadd.f32 %v243_v20, %v62_v18  ;;  %v74_v23 = vadd.f32 %v244_v21, %v63_v19 }
  0x96   :  { %v88_v26 = vpop.permute.xlu1 %87 }
  0x97   :  { %vm89_vm12 = vcmp.eq.s32.totalorder %v376_v5, %v88_v26  ;;  %vm90_vm13 = vcmp.eq.s32.totalorder %v19_v63, %v88_v26  ;;  %v84_v27 = vadd.f32 %v245_v24, %v73_v22  ;;  %v85_v28 = vadd.f32 %v246_v25, %v74_v23 }
  0x98   :  { %v247_v29 = vsel %vm89_vm12, 1.0, %v349_v2  ;;  %v248_v30 = vsel %vm90_vm13, 1.0, %v349_v2 }
  0x99   :  { %v95_v32 = vadd.f32 %v247_v29, %v84_v27  ;;  %v96_v33 = vadd.f32 %v248_v30, %v85_v28 }
  0x9b   :  { %v99_v31 = vpop.permute.xlu1 %98 }
  0x9c   :  { %vm100_vm14 = vcmp.eq.s32.totalorder %v376_v5, %v99_v31  ;;  %vm101_vm15 = vcmp.eq.s32.totalorder %v19_v63, %v99_v31 }
  0x9d   :  { %v249_v34 = vsel %vm100_vm14, 1.0, %v349_v2  ;;  %v250_v35 = vsel %vm101_vm15, 1.0, %v349_v2 }
  0x9e   :  { %v106_v36 = vadd.f32 %v249_v34, %v95_v32  ;;  %v107_v37 = vadd.f32 %v250_v35, %v96_v33 }
  0xa0   :  { %211 = vmatprep.mubr.f32.mxu0 %v107_v37 }
  0xa1   :  { %212 = vmatmul.mubr.f32.vlgmr.msra.gmra.mrb[0].mxu0 %v106_v36 }
 0x174   :  { %v284_v38 = vpop.f32.mrb[0].mxu0 }
 0x175   :  { %v285_v39 = vpop.f32.mrb[1].mxu0 }
 0x176   :  { %v286_v41 = vadd.f32 %v285_v39, %v284_v38 }
 0x178   :  { %v214_v42 = vadd.f32 %v286_v41, %v251_v40 }
 0x17a   :  { %v218_v43 = vsel %vm217_vm0, %v214_v42, -inf }
 0x17b   :  { %219 = vmax.xlane.f32.xlu0 %v218_v43 }
 0x208   :  { %v220_v5 = vpop.xlane.xlu0 %219 }
 0x209   :  { %v221_v44 = vsub.f32 %v214_v42, %v220_v5 }
 0x20b   :  { %v222_v45 = vmul.f32 1.442695, %v221_v44 }
 0x20d   :  { %337 = vpow2.f32 %v222_v45 }
 0x217   :  { %v338_v46 = vpop.eup %337 }
 0x218   :  { %v224_v47 = vsel %vm217_vm0, %v338_v46, 0.0 }
 0x219   :  { %225 = vadd.xlane.f32.xlu1 %v224_v47 }
 0x2a6   :  { %v226_v48 = vpop.xlane.xlu1 %225 }
 0x2a7   :  { %339 = vlog2.f32 %v226_v48 }
 0x2b1   :  { %v340_v49 = vpop.eup %339 }
 0x2b2   :  { %v228_v50 = vmul.f32 0.6931472, %v340_v49 }
 0x2b4   :  { %v229_v51 = vsub.f32 %v221_v44, %v228_v50 }
 0x2b6   :  { %230 = vst.msk [vmem:[%s503_s3] sm:$0xff] %vm217_vm0, %v229_v51 }

</bundles_post_ra>
